<compile_context>
chip_gen: v7x
topology: tpu7x:2x2x1
jax: 0.10.0
libtpu: 0.0.40
codegen_flags: <defaults>
</compile_context>

<pallas_src>
import jax
import jax.numpy as jnp
from jax.experimental import pallas as pl
from jax.experimental.pallas import tpu as pltpu


# ---------------------------------------------------------------------------
# In-kernel helpers
# ---------------------------------------------------------------------------
def _shift_lanes(x, s):
    """out[:, f] = x[:, f + s] if 0 <= f + s < n else 0  (s is a static int).

    Implemented as a 128-aligned concat with a zero slab followed by a static
    lane slice; Mosaic lowers this to XLU lane rotations + selects (the same
    machinery as a roll + mask) with unambiguous semantics and no wrap-around.
    """
    if s == 0:
        return x
    rows, n = x.shape
    if abs(s) >= n:                       # guards tiny H/W with the 7-tap kernels
        return jnp.zeros_like(x)
    zeros = jnp.zeros((rows, n), x.dtype)
    if s > 0:
        return jnp.concatenate([x, zeros], axis=1)[:, s:s + n]
    return jnp.concatenate([zeros, x], axis=1)[:, n + s:2 * n + s]


def _make_local_feature_kernel(W, num_taps):
    R = (num_taps - 1) // 2               # max shift radius (3 for a 7-tap stack)

    def kernel(x_ref, w1_ref, b1_ref, ww_ref, bw_ref, wh_ref, bh_ref,
               w2_ref, b2_ref, wmask_ref, out_ref):
        x = x_ref[0]                                        # (C, HW), lane-dense

        # branch_0 = Conv11_1(x):  (M, C) @ (C, HW) + b1
        b0 = jnp.dot(w1_ref[...], x,
                     preferred_element_type=jnp.float32) + b1_ref[...]   # (M, HW)

        # ---- 1x3 / 1x5 / 1x7 convs along W: one matmul per tap, all branches --
        # tmid rows = [Conv13(b0) ; Conv15(b0) ; Conv17(b0)]           (3M, HW)
        acc_w = None
        for t in range(num_taps):
            s = t - R
            if s == 0:
                piece = b0
            else:
                piece = _shift_lanes(b0, s) * wmask_ref[t:t + 1, :]
            contrib = jnp.dot(ww_ref[t], piece,
                              preferred_element_type=jnp.float32)
            acc_w = contrib if acc_w is None else acc_w + contrib
        tmid = acc_w + bw_ref[...]                                      # (3M, HW)

        # ---- 3x1 / 5x1 / 7x1 convs along H: lane shift by s*W ----------------
        # The flat zero-padding of _shift_lanes is exactly the H zero-padding,
        # so no extra mask is needed here.
        acc_h = None
        for t in range(num_taps):
            s = t - R
            piece = tmid if s == 0 else _shift_lanes(tmid, s * W)
            contrib = jnp.dot(wh_ref[t], piece,
                              preferred_element_type=jnp.float32)
            acc_h = contrib if acc_h is None else acc_h + contrib
        mix = b0 + acc_h + bh_ref[...]                                  # (M, HW)

        # bar_attn = Conv11_2(mix);  out = skip * bar_attn
        bar = jnp.dot(w2_ref[...], mix,
                      preferred_element_type=jnp.float32) + b2_ref[...]  # (C, HW)
        out_ref[0] = x * bar

    return kernel


# ---------------------------------------------------------------------------
# Wrapper (NCHW in / NCHW out, like the PyTorch module)
# ---------------------------------------------------------------------------
def local_feature_pallas(x_nchw, kp):
    N, C, H, W = x_nchw.shape
    HW = H * W
    num_taps = int(kp["num_taps"])
    x3 = x_nchw.reshape(N, C, HW)          # free reshape (contiguous), no transpose

    weights = (kp["w1"], kp["b1"], kp["ww"], kp["bw"], kp["wh"], kp["bh"],
               kp["w2"], kp["b2"], kp["wmask"])

    def full_block(a):
        nd = a.ndim
        return pl.BlockSpec(a.shape, lambda n, _nd=nd: (0,) * _nd)

    kernel = _make_local_feature_kernel(W, num_taps)

    out3 = pl.pallas_call(
        kernel,
        out_shape=jax.ShapeDtypeStruct((N, C, HW), jnp.float32),
        grid=(N,),
        in_specs=[pl.BlockSpec((1, C, HW), lambda n: (n, 0, 0))]
                 + [full_block(a) for a in weights],
        out_specs=pl.BlockSpec((1, C, HW), lambda n: (n, 0, 0)),
        compiler_params=pltpu.CompilerParams(
            dimension_semantics=("parallel",)),   # shards batch across v7x's 2 TCs
    )(x3, *weights)
    return out3.reshape(N, C, H, W)


# ---------------------------------------------------------------------------
# Deterministic parameter init (PyTorch OIHW shapes) + conversion for kernel
# ---------------------------------------------------------------------------
def init_torch_params(key, C, M):
    keys = jax.random.split(key, 16)

    def w(k, shape, fan_in):
        return jax.random.normal(k, shape, jnp.float32) / jnp.sqrt(float(fan_in))

    p = {}
    p["w11_1"], p["b11_1"] = w(keys[0], (M, C, 1, 1), C), w(keys[1], (M,), C)
    p["w13"], p["b13"] = w(keys[2], (M, M, 1, 3), 3 * M), w(keys[3], (M,), 3 * M)
    p["w31"], p["b31"] = w(keys[4], (M, M, 3, 1), 3 * M), w(keys[5], (M,), 3 * M)
    p["w15"], p["b15"] = w(keys[6], (M, M, 1, 5), 5 * M), w(keys[7], (M,), 5 * M)
    p["w51"], p["b51"] = w(keys[8], (M, M, 5, 1), 5 * M), w(keys[9], (M,), 5 * M)
    p["w17"], p["b17"] = w(keys[10], (M, M, 1, 7), 7 * M), w(keys[11], (M,), 7 * M)
    p["w71"], p["b71"] = w(keys[12], (M, M, 7, 1), 7 * M), w(keys[13], (M,), 7 * M)
    p["w11_2"], p["b11_2"] = w(keys[14], (C, M, 1, 1), M), w(keys[15], (C,), M)
    return p


def to_kernel_params(tp, H, W):
    """Pack weights for the lane-dense kernel.

    ww[t] : (3M, M) per-tap channel mix for the three 1xk convs (tap shift t-3).
    wh[t] : (M, 3M) per-tap channel mix for the three kx1 convs, summing the
            three branches directly into the M-channel mix.
    wmask : (7, H*W) row-boundary validity mask for the W-direction taps.
    """
    M, C = tp["w11_1"].shape[:2]
    R = 3
    NT = 2 * R + 1

    w1 = tp["w11_1"][:, :, 0, 0]                           # (M, C)
    b1 = tp["b11_1"].reshape(M, 1)
    w2 = tp["w11_2"][:, :, 0, 0]                           # (C, M)
    b2 = tp["b11_2"].reshape(C, 1)

    ww = jnp.zeros((NT, 3 * M, M), jnp.float32)
    for bi, name in enumerate(("w13", "w15", "w17")):
        wt = tp[name][:, :, 0, :]                          # (M, M, k)
        k = wt.shape[-1]
        p = (k - 1) // 2
        for j in range(k):
            t = (j - p) + R
            ww = ww.at[t, bi * M:(bi + 1) * M, :].set(wt[:, :, j])
    bw = jnp.concatenate([tp["b13"], tp["b15"], tp["b17"]]).reshape(3 * M, 1)

    wh = jnp.zeros((NT, M, 3 * M), jnp.float32)
    for bi, name in enumerate(("w31", "w51", "w71")):
        wt = tp[name][:, :, :, 0]                          # (M, M, k)
        k = wt.shape[-1]
        p = (k - 1) // 2
        for j in range(k):
            t = (j - p) + R
            wh = wh.at[t, :, bi * M:(bi + 1) * M].set(wt[:, :, j])
    bh = (tp["b31"] + tp["b51"] + tp["b71"]).reshape(M, 1)

    col = jnp.arange(H * W, dtype=jnp.int32) % W
    wmask = jnp.stack(
        [((col + (t - R) >= 0) & (col + (t - R) < W)).astype(jnp.float32)
         for t in range(NT)])                              # (NT, H*W)

    return dict(w1=w1, b1=b1, ww=ww, bw=bw, wh=wh, bh=bh,
                w2=w2, b2=b2, wmask=wmask, num_taps=NT)


# ---------------------------------------------------------------------------
# Pure-JAX reference (matches PyTorch NCHW semantics exactly; full f32 precision)
# ---------------------------------------------------------------------------
def _conv_nchw(x, w, b, ph, pw):
    y = jax.lax.conv_general_dilated(
        x, w, window_strides=(1, 1),
        padding=((ph, ph), (pw, pw)),
        dimension_numbers=("NCHW", "OIHW", "NCHW"),
        precision=jax.lax.Precision.HIGHEST)
    return y + b[None, :, None, None]


def local_feature_ref(x, tp):
    b0 = _conv_nchw(x, tp["w11_1"], tp["b11_1"], 0, 0)
    br1 = _conv_nchw(_conv_nchw(b0, tp["w13"], tp["b13"], 0, 1),
                     tp["w31"], tp["b31"], 1, 0)
    br2 = _conv_nchw(_conv_nchw(b0, tp["w15"], tp["b15"], 0, 2),
                     tp["w51"], tp["b51"], 2, 0)
    br3 = _conv_nchw(_conv_nchw(b0, tp["w17"], tp["b17"], 0, 3),
                     tp["w71"], tp["b71"], 3, 0)
    mix = b0 + br1 + br2 + br3
    bar = _conv_nchw(mix, tp["w11_2"], tp["b11_2"], 0, 0)
    return x * bar


# ---------------------------------------------------------------------------
if __name__ == "__main__":
    key = jax.random.PRNGKey(0)
    kx, kparam = jax.random.split(key)

    N, C, H, W = 2, 32, 16, 16
    reduction_ratio = 8
    M = C // reduction_ratio

    x = jax.random.normal(kx, (N, C, H, W), jnp.float32)
    torch_params = init_torch_params(kparam, C, M)
    kernel_params = to_kernel_params(torch_params, H, W)

    out = local_feature_pallas(x, kernel_params)
    out = jax.block_until_ready(out)

    ref = local_feature_ref(x, torch_params)
    assert out.shape == ref.shape == (N, C, H, W)
    max_err = float(jnp.max(jnp.abs(out - ref)))
    # Tolerance covers the backend-dependent reduced-precision f32 MXU passes
    # inside the Pallas matmuls; the reference above is exact f32 (HIGHEST).
    if not bool(jnp.allclose(out, ref, atol=2e-2, rtol=2e-2)):
        raise AssertionError(
            f"Pallas kernel mismatch vs reference, max abs err = {max_err}")
    print("KERNEL_OK")
</pallas_src>

<mosaic_0001>
module attributes {stable_mosaic.version = 11 : i64} {
  func.func @kernel(%arg0: i32, %arg1: memref<1x32x256xf32, #tpu.memory_space<vmem>>, %arg2: memref<4x32xf32, #tpu.memory_space<vmem>>, %arg3: memref<4x1xf32, #tpu.memory_space<vmem>>, %arg4: memref<7x12x4xf32, #tpu.memory_space<vmem>>, %arg5: memref<12x1xf32, #tpu.memory_space<vmem>>, %arg6: memref<7x4x12xf32, #tpu.memory_space<vmem>>, %arg7: memref<4x1xf32, #tpu.memory_space<vmem>>, %arg8: memref<32x4xf32, #tpu.memory_space<vmem>>, %arg9: memref<32x1xf32, #tpu.memory_space<vmem>>, %arg10: memref<7x256xf32, #tpu.memory_space<vmem>>, %arg11: memref<1x32x256xf32, #tpu.memory_space<vmem>>) attributes {dimension_semantics = [#tpu.dimension_semantics<parallel>], iteration_bounds = array<i64: 2>, scalar_prefetch = 0 : i64, scratch_operands = 0 : i64, tpu.core_type = #tpu.core_type<tc>, window_params = [{transform_indices = @transform_0, window_bounds = array<i64: 1, 32, 256>}, {pipeline_mode = #tpu.pipeline_mode<synchronous>, transform_indices = @transform_1, window_bounds = array<i64: 4, 32>}, {pipeline_mode = #tpu.pipeline_mode<synchronous>, transform_indices = @transform_2, window_bounds = array<i64: 4, 1>}, {pipeline_mode = #tpu.pipeline_mode<synchronous>, transform_indices = @transform_3, window_bounds = array<i64: 7, 12, 4>}, {pipeline_mode = #tpu.pipeline_mode<synchronous>, transform_indices = @transform_4, window_bounds = array<i64: 12, 1>}, {pipeline_mode = #tpu.pipeline_mode<synchronous>, transform_indices = @transform_5, window_bounds = array<i64: 7, 4, 12>}, {pipeline_mode = #tpu.pipeline_mode<synchronous>, transform_indices = @transform_6, window_bounds = array<i64: 4, 1>}, {pipeline_mode = #tpu.pipeline_mode<synchronous>, transform_indices = @transform_7, window_bounds = array<i64: 32, 4>}, {pipeline_mode = #tpu.pipeline_mode<synchronous>, transform_indices = @transform_8, window_bounds = array<i64: 32, 1>}, {pipeline_mode = #tpu.pipeline_mode<synchronous>, transform_indices = @transform_9, window_bounds = array<i64: 7, 256>}, {transform_indices = @transform_10, window_bounds = array<i64: 1, 32, 256>}]} {
    %c0 = arith.constant 0 : index
    %c0_0 = arith.constant 0 : index
    %c0_1 = arith.constant 0 : index
    %0 = vector.load %arg1[%c0, %c0_0, %c0_1] : memref<1x32x256xf32, #tpu.memory_space<vmem>>, vector<1x32x256xf32>
    %1 = vector.shape_cast %0 : vector<1x32x256xf32> to vector<32x256xf32>
    %c0_2 = arith.constant 0 : index
    %c0_3 = arith.constant 0 : index
    %2 = vector.load %arg2[%c0_2, %c0_3] : memref<4x32xf32, #tpu.memory_space<vmem>>, vector<4x32xf32>
    %cst = arith.constant dense<0.000000e+00> : vector<4x256xf32>
    %3 = tpu.matmul %2, %1, %cst {dimension_numbers = #tpu.dot_dimension_numbers<[1], [0], [0], [1], [0, 0, 1, 1], [], []>} : vector<4x32xf32>, vector<32x256xf32>, vector<4x256xf32> -> vector<4x256xf32>
    %c0_4 = arith.constant 0 : index
    %c0_5 = arith.constant 0 : index
    %4 = vector.load %arg3[%c0_4, %c0_5] : memref<4x1xf32, #tpu.memory_space<vmem>>, vector<4x1xf32>
    %5 = vector.broadcast %4 : vector<4x1xf32> to vector<4x256xf32>
    %6 = arith.addf %3, %5 : vector<4x256xf32>
    %cst_6 = arith.constant 0.000000e+00 : f32
    %7 = vector.broadcast %cst_6 : f32 to vector<4x256xf32>
    %8 = tpu.concatenate %7, %6 in 1 : vector<4x256xf32>, vector<4x256xf32> -> vector<4x512xf32>
    %9 = vector.extract_strided_slice %8 {offsets = [0, 253], sizes = [4, 256], strides = [1, 1]} : vector<4x512xf32> to vector<4x256xf32>
    %c0_7 = arith.constant 0 : index
    %c0_8 = arith.constant 0 : index
    %10 = vector.load %arg10[%c0_7, %c0_8] : memref<7x256xf32, #tpu.memory_space<vmem>>, vector<1x256xf32>
    %11 = vector.broadcast %10 : vector<1x256xf32> to vector<4x256xf32>
    %12 = arith.mulf %9, %11 : vector<4x256xf32>
    %c0_9 = arith.constant 0 : index
    %c0_10 = arith.constant 0 : index
    %c0_11 = arith.constant 0 : index
    %13 = vector.load %arg4[%c0_9, %c0_10, %c0_11] : memref<7x12x4xf32, #tpu.memory_space<vmem>>, vector<1x12x4xf32>
    %14 = vector.shape_cast %13 : vector<1x12x4xf32> to vector<12x4xf32>
    %cst_12 = arith.constant dense<0.000000e+00> : vector<12x256xf32>
    %15 = tpu.matmul %14, %12, %cst_12 {dimension_numbers = #tpu.dot_dimension_numbers<[1], [0], [0], [1], [0, 0, 1, 1], [], []>} : vector<12x4xf32>, vector<4x256xf32>, vector<12x256xf32> -> vector<12x256xf32>
    %cst_13 = arith.constant 0.000000e+00 : f32
    %16 = vector.broadcast %cst_13 : f32 to vector<4x256xf32>
    %17 = tpu.concatenate %16, %6 in 1 : vector<4x256xf32>, vector<4x256xf32> -> vector<4x512xf32>
    %18 = vector.extract_strided_slice %17 {offsets = [0, 254], sizes = [4, 256], strides = [1, 1]} : vector<4x512xf32> to vector<4x256xf32>
    %c1 = arith.constant 1 : index
    %c0_14 = arith.constant 0 : index
    %19 = vector.load %arg10[%c1, %c0_14] : memref<7x256xf32, #tpu.memory_space<vmem>>, vector<1x256xf32>
    %20 = vector.broadcast %19 : vector<1x256xf32> to vector<4x256xf32>
    %21 = arith.mulf %18, %20 : vector<4x256xf32>
    %c1_15 = arith.constant 1 : index
    %c0_16 = arith.constant 0 : index
    %c0_17 = arith.constant 0 : index
    %22 = vector.load %arg4[%c1_15, %c0_16, %c0_17] : memref<7x12x4xf32, #tpu.memory_space<vmem>>, vector<1x12x4xf32>
    %23 = vector.shape_cast %22 : vector<1x12x4xf32> to vector<12x4xf32>
    %cst_18 = arith.constant dense<0.000000e+00> : vector<12x256xf32>
    %24 = tpu.matmul %23, %21, %cst_18 {dimension_numbers = #tpu.dot_dimension_numbers<[1], [0], [0], [1], [0, 0, 1, 1], [], []>} : vector<12x4xf32>, vector<4x256xf32>, vector<12x256xf32> -> vector<12x256xf32>
    %25 = arith.addf %15, %24 : vector<12x256xf32>
    %cst_19 = arith.constant 0.000000e+00 : f32
    %26 = vector.broadcast %cst_19 : f32 to vector<4x256xf32>
    %27 = tpu.concatenate %26, %6 in 1 : vector<4x256xf32>, vector<4x256xf32> -> vector<4x512xf32>
    %28 = vector.extract_strided_slice %27 {offsets = [0, 255], sizes = [4, 256], strides = [1, 1]} : vector<4x512xf32> to vector<4x256xf32>
    %c2 = arith.constant 2 : index
    %c0_20 = arith.constant 0 : index
    %29 = vector.load %arg10[%c2, %c0_20] : memref<7x256xf32, #tpu.memory_space<vmem>>, vector<1x256xf32>
    %30 = vector.broadcast %29 : vector<1x256xf32> to vector<4x256xf32>
    %31 = arith.mulf %28, %30 : vector<4x256xf32>
    %c2_21 = arith.constant 2 : index
    %c0_22 = arith.constant 0 : index
    %c0_23 = arith.constant 0 : index
    %32 = vector.load %arg4[%c2_21, %c0_22, %c0_23] : memref<7x12x4xf32, #tpu.memory_space<vmem>>, vector<1x12x4xf32>
    %33 = vector.shape_cast %32 : vector<1x12x4xf32> to vector<12x4xf32>
    %cst_24 = arith.constant dense<0.000000e+00> : vector<12x256xf32>
    %34 = tpu.matmul %33, %31, %cst_24 {dimension_numbers = #tpu.dot_dimension_numbers<[1], [0], [0], [1], [0, 0, 1, 1], [], []>} : vector<12x4xf32>, vector<4x256xf32>, vector<12x256xf32> -> vector<12x256xf32>
    %35 = arith.addf %25, %34 : vector<12x256xf32>
    %c3 = arith.constant 3 : index
    %c0_25 = arith.constant 0 : index
    %c0_26 = arith.constant 0 : index
    %36 = vector.load %arg4[%c3, %c0_25, %c0_26] : memref<7x12x4xf32, #tpu.memory_space<vmem>>, vector<1x12x4xf32>
    %37 = vector.shape_cast %36 : vector<1x12x4xf32> to vector<12x4xf32>
    %cst_27 = arith.constant dense<0.000000e+00> : vector<12x256xf32>
    %38 = tpu.matmul %37, %6, %cst_27 {dimension_numbers = #tpu.dot_dimension_numbers<[1], [0], [0], [1], [0, 0, 1, 1], [], []>} : vector<12x4xf32>, vector<4x256xf32>, vector<12x256xf32> -> vector<12x256xf32>
    %39 = arith.addf %35, %38 : vector<12x256xf32>
    %cst_28 = arith.constant 0.000000e+00 : f32
    %40 = vector.broadcast %cst_28 : f32 to vector<4x256xf32>
    %41 = tpu.concatenate %6, %40 in 1 : vector<4x256xf32>, vector<4x256xf32> -> vector<4x512xf32>
    %42 = vector.extract_strided_slice %41 {offsets = [0, 1], sizes = [4, 256], strides = [1, 1]} : vector<4x512xf32> to vector<4x256xf32>
    %c4 = arith.constant 4 : index
    %c0_29 = arith.constant 0 : index
    %43 = vector.load %arg10[%c4, %c0_29] : memref<7x256xf32, #tpu.memory_space<vmem>>, vector<1x256xf32>
    %44 = vector.broadcast %43 : vector<1x256xf32> to vector<4x256xf32>
    %45 = arith.mulf %42, %44 : vector<4x256xf32>
    %c4_30 = arith.constant 4 : index
    %c0_31 = arith.constant 0 : index
    %c0_32 = arith.constant 0 : index
    %46 = vector.load %arg4[%c4_30, %c0_31, %c0_32] : memref<7x12x4xf32, #tpu.memory_space<vmem>>, vector<1x12x4xf32>
    %47 = vector.shape_cast %46 : vector<1x12x4xf32> to vector<12x4xf32>
    %cst_33 = arith.constant dense<0.000000e+00> : vector<12x256xf32>
    %48 = tpu.matmul %47, %45, %cst_33 {dimension_numbers = #tpu.dot_dimension_numbers<[1], [0], [0], [1], [0, 0, 1, 1], [], []>} : vector<12x4xf32>, vector<4x256xf32>, vector<12x256xf32> -> vector<12x256xf32>
    %49 = arith.addf %39, %48 : vector<12x256xf32>
    %cst_34 = arith.constant 0.000000e+00 : f32
    %50 = vector.broadcast %cst_34 : f32 to vector<4x256xf32>
    %51 = tpu.concatenate %6, %50 in 1 : vector<4x256xf32>, vector<4x256xf32> -> vector<4x512xf32>
    %52 = vector.extract_strided_slice %51 {offsets = [0, 2], sizes = [4, 256], strides = [1, 1]} : vector<4x512xf32> to vector<4x256xf32>
    %c5 = arith.constant 5 : index
    %c0_35 = arith.constant 0 : index
    %53 = vector.load %arg10[%c5, %c0_35] : memref<7x256xf32, #tpu.memory_space<vmem>>, vector<1x256xf32>
    %54 = vector.broadcast %53 : vector<1x256xf32> to vector<4x256xf32>
    %55 = arith.mulf %52, %54 : vector<4x256xf32>
    %c5_36 = arith.constant 5 : index
    %c0_37 = arith.constant 0 : index
    %c0_38 = arith.constant 0 : index
    %56 = vector.load %arg4[%c5_36, %c0_37, %c0_38] : memref<7x12x4xf32, #tpu.memory_space<vmem>>, vector<1x12x4xf32>
    %57 = vector.shape_cast %56 : vector<1x12x4xf32> to vector<12x4xf32>
    %cst_39 = arith.constant dense<0.000000e+00> : vector<12x256xf32>
    %58 = tpu.matmul %57, %55, %cst_39 {dimension_numbers = #tpu.dot_dimension_numbers<[1], [0], [0], [1], [0, 0, 1, 1], [], []>} : vector<12x4xf32>, vector<4x256xf32>, vector<12x256xf32> -> vector<12x256xf32>
    %59 = arith.addf %49, %58 : vector<12x256xf32>
    %cst_40 = arith.constant 0.000000e+00 : f32
    %60 = vector.broadcast %cst_40 : f32 to vector<4x256xf32>
    %61 = tpu.concatenate %6, %60 in 1 : vector<4x256xf32>, vector<4x256xf32> -> vector<4x512xf32>
    %62 = vector.extract_strided_slice %61 {offsets = [0, 3], sizes = [4, 256], strides = [1, 1]} : vector<4x512xf32> to vector<4x256xf32>
    %c6 = arith.constant 6 : index
    %c0_41 = arith.constant 0 : index
    %63 = vector.load %arg10[%c6, %c0_41] : memref<7x256xf32, #tpu.memory_space<vmem>>, vector<1x256xf32>
    %64 = vector.broadcast %63 : vector<1x256xf32> to vector<4x256xf32>
    %65 = arith.mulf %62, %64 : vector<4x256xf32>
    %c6_42 = arith.constant 6 : index
    %c0_43 = arith.constant 0 : index
    %c0_44 = arith.constant 0 : index
    %66 = vector.load %arg4[%c6_42, %c0_43, %c0_44] : memref<7x12x4xf32, #tpu.memory_space<vmem>>, vector<1x12x4xf32>
    %67 = vector.shape_cast %66 : vector<1x12x4xf32> to vector<12x4xf32>
    %cst_45 = arith.constant dense<0.000000e+00> : vector<12x256xf32>
    %68 = tpu.matmul %67, %65, %cst_45 {dimension_numbers = #tpu.dot_dimension_numbers<[1], [0], [0], [1], [0, 0, 1, 1], [], []>} : vector<12x4xf32>, vector<4x256xf32>, vector<12x256xf32> -> vector<12x256xf32>
    %69 = arith.addf %59, %68 : vector<12x256xf32>
    %c0_46 = arith.constant 0 : index
    %c0_47 = arith.constant 0 : index
    %70 = vector.load %arg5[%c0_46, %c0_47] : memref<12x1xf32, #tpu.memory_space<vmem>>, vector<12x1xf32>
    %71 = vector.broadcast %70 : vector<12x1xf32> to vector<12x256xf32>
    %72 = arith.addf %69, %71 : vector<12x256xf32>
    %cst_48 = arith.constant 0.000000e+00 : f32
    %73 = vector.broadcast %cst_48 : f32 to vector<12x256xf32>
    %74 = tpu.concatenate %73, %72 in 1 : vector<12x256xf32>, vector<12x256xf32> -> vector<12x512xf32>
    %75 = vector.extract_strided_slice %74 {offsets = [0, 208], sizes = [12, 256], strides = [1, 1]} : vector<12x512xf32> to vector<12x256xf32>
    %c0_49 = arith.constant 0 : index
    %c0_50 = arith.constant 0 : index
    %c0_51 = arith.constant 0 : index
    %76 = vector.load %arg6[%c0_49, %c0_50, %c0_51] : memref<7x4x12xf32, #tpu.memory_space<vmem>>, vector<1x4x12xf32>
    %77 = vector.shape_cast %76 : vector<1x4x12xf32> to vector<4x12xf32>
    %cst_52 = arith.constant dense<0.000000e+00> : vector<4x256xf32>
    %78 = tpu.matmul %77, %75, %cst_52 {dimension_numbers = #tpu.dot_dimension_numbers<[1], [0], [0], [1], [0, 0, 1, 1], [], []>} : vector<4x12xf32>, vector<12x256xf32>, vector<4x256xf32> -> vector<4x256xf32>
    %cst_53 = arith.constant 0.000000e+00 : f32
    %79 = vector.broadcast %cst_53 : f32 to vector<12x256xf32>
    %80 = tpu.concatenate %79, %72 in 1 : vector<12x256xf32>, vector<12x256xf32> -> vector<12x512xf32>
    %81 = vector.extract_strided_slice %80 {offsets = [0, 224], sizes = [12, 256], strides = [1, 1]} : vector<12x512xf32> to vector<12x256xf32>
    %c1_54 = arith.constant 1 : index
    %c0_55 = arith.constant 0 : index
    %c0_56 = arith.constant 0 : index
    %82 = vector.load %arg6[%c1_54, %c0_55, %c0_56] : memref<7x4x12xf32, #tpu.memory_space<vmem>>, vector<1x4x12xf32>
    %83 = vector.shape_cast %82 : vector<1x4x12xf32> to vector<4x12xf32>
    %cst_57 = arith.constant dense<0.000000e+00> : vector<4x256xf32>
    %84 = tpu.matmul %83, %81, %cst_57 {dimension_numbers = #tpu.dot_dimension_numbers<[1], [0], [0], [1], [0, 0, 1, 1], [], []>} : vector<4x12xf32>, vector<12x256xf32>, vector<4x256xf32> -> vector<4x256xf32>
    %85 = arith.addf %78, %84 : vector<4x256xf32>
    %cst_58 = arith.constant 0.000000e+00 : f32
    %86 = vector.broadcast %cst_58 : f32 to vector<12x256xf32>
    %87 = tpu.concatenate %86, %72 in 1 : vector<12x256xf32>, vector<12x256xf32> -> vector<12x512xf32>
    %88 = vector.extract_strided_slice %87 {offsets = [0, 240], sizes = [12, 256], strides = [1, 1]} : vector<12x512xf32> to vector<12x256xf32>
    %c2_59 = arith.constant 2 : index
    %c0_60 = arith.constant 0 : index
    %c0_61 = arith.constant 0 : index
    %89 = vector.load %arg6[%c2_59, %c0_60, %c0_61] : memref<7x4x12xf32, #tpu.memory_space<vmem>>, vector<1x4x12xf32>
    %90 = vector.shape_cast %89 : vector<1x4x12xf32> to vector<4x12xf32>
    %cst_62 = arith.constant dense<0.000000e+00> : vector<4x256xf32>
    %91 = tpu.matmul %90, %88, %cst_62 {dimension_numbers = #tpu.dot_dimension_numbers<[1], [0], [0], [1], [0, 0, 1, 1], [], []>} : vector<4x12xf32>, vector<12x256xf32>, vector<4x256xf32> -> vector<4x256xf32>
    %92 = arith.addf %85, %91 : vector<4x256xf32>
    %c3_63 = arith.constant 3 : index
    %c0_64 = arith.constant 0 : index
    %c0_65 = arith.constant 0 : index
    %93 = vector.load %arg6[%c3_63, %c0_64, %c0_65] : memref<7x4x12xf32, #tpu.memory_space<vmem>>, vector<1x4x12xf32>
    %94 = vector.shape_cast %93 : vector<1x4x12xf32> to vector<4x12xf32>
    %cst_66 = arith.constant dense<0.000000e+00> : vector<4x256xf32>
    %95 = tpu.matmul %94, %72, %cst_66 {dimension_numbers = #tpu.dot_dimension_numbers<[1], [0], [0], [1], [0, 0, 1, 1], [], []>} : vector<4x12xf32>, vector<12x256xf32>, vector<4x256xf32> -> vector<4x256xf32>
    %96 = arith.addf %92, %95 : vector<4x256xf32>
    %cst_67 = arith.constant 0.000000e+00 : f32
    %97 = vector.broadcast %cst_67 : f32 to vector<12x256xf32>
    %98 = tpu.concatenate %72, %97 in 1 : vector<12x256xf32>, vector<12x256xf32> -> vector<12x512xf32>
    %99 = vector.extract_strided_slice %98 {offsets = [0, 16], sizes = [12, 256], strides = [1, 1]} : vector<12x512xf32> to vector<12x256xf32>
    %c4_68 = arith.constant 4 : index
    %c0_69 = arith.constant 0 : index
    %c0_70 = arith.constant 0 : index
    %100 = vector.load %arg6[%c4_68, %c0_69, %c0_70] : memref<7x4x12xf32, #tpu.memory_space<vmem>>, vector<1x4x12xf32>
    %101 = vector.shape_cast %100 : vector<1x4x12xf32> to vector<4x12xf32>
    %cst_71 = arith.constant dense<0.000000e+00> : vector<4x256xf32>
    %102 = tpu.matmul %101, %99, %cst_71 {dimension_numbers = #tpu.dot_dimension_numbers<[1], [0], [0], [1], [0, 0, 1, 1], [], []>} : vector<4x12xf32>, vector<12x256xf32>, vector<4x256xf32> -> vector<4x256xf32>
    %103 = arith.addf %96, %102 : vector<4x256xf32>
    %cst_72 = arith.constant 0.000000e+00 : f32
    %104 = vector.broadcast %cst_72 : f32 to vector<12x256xf32>
    %105 = tpu.concatenate %72, %104 in 1 : vector<12x256xf32>, vector<12x256xf32> -> vector<12x512xf32>
    %106 = vector.extract_strided_slice %105 {offsets = [0, 32], sizes = [12, 256], strides = [1, 1]} : vector<12x512xf32> to vector<12x256xf32>
    %c5_73 = arith.constant 5 : index
    %c0_74 = arith.constant 0 : index
    %c0_75 = arith.constant 0 : index
    %107 = vector.load %arg6[%c5_73, %c0_74, %c0_75] : memref<7x4x12xf32, #tpu.memory_space<vmem>>, vector<1x4x12xf32>
    %108 = vector.shape_cast %107 : vector<1x4x12xf32> to vector<4x12xf32>
    %cst_76 = arith.constant dense<0.000000e+00> : vector<4x256xf32>
    %109 = tpu.matmul %108, %106, %cst_76 {dimension_numbers = #tpu.dot_dimension_numbers<[1], [0], [0], [1], [0, 0, 1, 1], [], []>} : vector<4x12xf32>, vector<12x256xf32>, vector<4x256xf32> -> vector<4x256xf32>
    %110 = arith.addf %103, %109 : vector<4x256xf32>
    %cst_77 = arith.constant 0.000000e+00 : f32
    %111 = vector.broadcast %cst_77 : f32 to vector<12x256xf32>
    %112 = tpu.concatenate %72, %111 in 1 : vector<12x256xf32>, vector<12x256xf32> -> vector<12x512xf32>
    %113 = vector.extract_strided_slice %112 {offsets = [0, 48], sizes = [12, 256], strides = [1, 1]} : vector<12x512xf32> to vector<12x256xf32>
    %c6_78 = arith.constant 6 : index
    %c0_79 = arith.constant 0 : index
    %c0_80 = arith.constant 0 : index
    %114 = vector.load %arg6[%c6_78, %c0_79, %c0_80] : memref<7x4x12xf32, #tpu.memory_space<vmem>>, vector<1x4x12xf32>
    %115 = vector.shape_cast %114 : vector<1x4x12xf32> to vector<4x12xf32>
    %cst_81 = arith.constant dense<0.000000e+00> : vector<4x256xf32>
    %116 = tpu.matmul %115, %113, %cst_81 {dimension_numbers = #tpu.dot_dimension_numbers<[1], [0], [0], [1], [0, 0, 1, 1], [], []>} : vector<4x12xf32>, vector<12x256xf32>, vector<4x256xf32> -> vector<4x256xf32>
    %117 = arith.addf %110, %116 : vector<4x256xf32>
    %118 = arith.addf %6, %117 : vector<4x256xf32>
    %c0_82 = arith.constant 0 : index
    %c0_83 = arith.constant 0 : index
    %119 = vector.load %arg7[%c0_82, %c0_83] : memref<4x1xf32, #tpu.memory_space<vmem>>, vector<4x1xf32>
    %120 = vector.broadcast %119 : vector<4x1xf32> to vector<4x256xf32>
    %121 = arith.addf %118, %120 : vector<4x256xf32>
    %c0_84 = arith.constant 0 : index
    %c0_85 = arith.constant 0 : index
    %122 = vector.load %arg8[%c0_84, %c0_85] : memref<32x4xf32, #tpu.memory_space<vmem>>, vector<32x4xf32>
    %cst_86 = arith.constant dense<0.000000e+00> : vector<32x256xf32>
    %123 = tpu.matmul %122, %121, %cst_86 {dimension_numbers = #tpu.dot_dimension_numbers<[1], [0], [0], [1], [0, 0, 1, 1], [], []>} : vector<32x4xf32>, vector<4x256xf32>, vector<32x256xf32> -> vector<32x256xf32>
    %c0_87 = arith.constant 0 : index
    %c0_88 = arith.constant 0 : index
    %124 = vector.load %arg9[%c0_87, %c0_88] : memref<32x1xf32, #tpu.memory_space<vmem>>, vector<32x1xf32>
    %125 = vector.broadcast %124 : vector<32x1xf32> to vector<32x256xf32>
    %126 = arith.addf %123, %125 : vector<32x256xf32>
    %127 = arith.mulf %1, %126 : vector<32x256xf32>
    %c0_89 = arith.constant 0 : index
    %c0_90 = arith.constant 0 : index
    %c0_91 = arith.constant 0 : index
    %128 = vector.load %arg11[%c0_89, %c0_90, %c0_91] : memref<1x32x256xf32, #tpu.memory_space<vmem>>, vector<1x32x256xf32>
    %129 = vector.shape_cast %128 : vector<1x32x256xf32> to vector<32x256xf32>
    %130 = vector.shape_cast %127 : vector<32x256xf32> to vector<1x32x256xf32>
    tpu.vector_store %arg11[%c0_89, %c0_90, %c0_91], %130 {strides = array<i32>} : memref<1x32x256xf32, #tpu.memory_space<vmem>>, vector<1x32x256xf32>,
    return
  }
  func.func @transform_0(%arg0: i32) -> (i32, i32, i32) {
    %c0_i32 = arith.constant 0 : i32
    %c0_i32_0 = arith.constant 0 : i32
    %c0_i32_1 = arith.constant 0 : i32
    return %arg0, %c0_i32, %c0_i32_0 : i32, i32, i32
  }
  func.func @transform_1(%arg0: i32) -> (i32, i32) {
    %c0_i32 = arith.constant 0 : i32
    %c0_i32_0 = arith.constant 0 : i32
    %c0_i32_1 = arith.constant 0 : i32
    return %c0_i32, %c0_i32_0 : i32, i32
  }
  func.func @transform_2(%arg0: i32) -> (i32, i32) {
    %c0_i32 = arith.constant 0 : i32
    %c0_i32_0 = arith.constant 0 : i32
    %c0_i32_1 = arith.constant 0 : i32
    return %c0_i32, %c0_i32_0 : i32, i32
  }
  func.func @transform_3(%arg0: i32) -> (i32, i32, i32) {
    %c0_i32 = arith.constant 0 : i32
    %c0_i32_0 = arith.constant 0 : i32
    %c0_i32_1 = arith.constant 0 : i32
    %c0_i32_2 = arith.constant 0 : i32
    return %c0_i32, %c0_i32_0, %c0_i32_1 : i32, i32, i32
  }
  func.func @transform_4(%arg0: i32) -> (i32, i32) {
    %c0_i32 = arith.constant 0 : i32
    %c0_i32_0 = arith.constant 0 : i32
    %c0_i32_1 = arith.constant 0 : i32
    return %c0_i32, %c0_i32_0 : i32, i32
  }
  func.func @transform_5(%arg0: i32) -> (i32, i32, i32) {
    %c0_i32 = arith.constant 0 : i32
    %c0_i32_0 = arith.constant 0 : i32
    %c0_i32_1 = arith.constant 0 : i32
    %c0_i32_2 = arith.constant 0 : i32
    return %c0_i32, %c0_i32_0, %c0_i32_1 : i32, i32, i32
  }
  func.func @transform_6(%arg0: i32) -> (i32, i32) {
    %c0_i32 = arith.constant 0 : i32
    %c0_i32_0 = arith.constant 0 : i32
    %c0_i32_1 = arith.constant 0 : i32
    return %c0_i32, %c0_i32_0 : i32, i32
  }
  func.func @transform_7(%arg0: i32) -> (i32, i32) {
    %c0_i32 = arith.constant 0 : i32
    %c0_i32_0 = arith.constant 0 : i32
    %c0_i32_1 = arith.constant 0 : i32
    return %c0_i32, %c0_i32_0 : i32, i32
  }
  func.func @transform_8(%arg0: i32) -> (i32, i32) {
    %c0_i32 = arith.constant 0 : i32
    %c0_i32_0 = arith.constant 0 : i32
    %c0_i32_1 = arith.constant 0 : i32
    return %c0_i32, %c0_i32_0 : i32, i32
  }
  func.func @transform_9(%arg0: i32) -> (i32, i32) {
    %c0_i32 = arith.constant 0 : i32
    %c0_i32_0 = arith.constant 0 : i32
    %c0_i32_1 = arith.constant 0 : i32
    return %c0_i32, %c0_i32_0 : i32, i32
  }
  func.func @transform_10(%arg0: i32) -> (i32, i32, i32) {
    %c0_i32 = arith.constant 0 : i32
    %c0_i32_0 = arith.constant 0 : i32
    %c0_i32_1 = arith.constant 0 : i32
    return %arg0, %c0_i32, %c0_i32_0 : i32, i32, i32
  }
}

</mosaic_0001>

<bundles_post_ra>
// kernel: tpu_custom_call.1
= control target key start
LH: loop header
LB: loop body
LE: loop exit
PB: predicated region body
PF: predicated region fallthrough
CT: control target
= control target key end

     0   :  { %15 = vsyncpa [#allocation3], 0  ;;  %s3151_s0 = inlined_call_operand.vmem [shape: f32[2,32,256], index: 0, kind: input, shape index: {}]   ;;  %s3152_s1 = inlined_call_operand.vmem [shape: f32[4,32], index: 1, kind: input, shape index: {}]   ;;  %s3153_s2 = inlined_call_operand.vmem [shape: f32[4,1], index: 2, kind: input, shape index: {}]   ;;  %s3154_s3 = inlined_call_operand.vmem [shape: f32[7,12,4], index: 3, kind: input, shape index: {}]   ;;  %s3155_s4 = inlined_call_operand.vmem [shape: f32[12,1], index: 4, kind: input, shape index: {}]   ;;  %s3156_s5 = inlined_call_operand.vmem [shape: f32[7,4,12], index: 5, kind: input, shape index: {}]   ;;  %s3157_s6 = inlined_call_operand.vmem [shape: f32[4,1], index: 6, kind: input, shape index: {}]   ;;  %s3158_s7 = inlined_call_operand.vmem [shape: f32[32,4], index: 7, kind: input, shape index: {}]   ;;  %s3159_s8 = inlined_call_operand.vmem [shape: f32[32,1], index: 8, kind: input, shape index: {}]   ;;  %s3160_s9 = inlined_call_operand.vmem [shape: f32[7,256], index: 9, kind: input, shape index: {}]   ;;  %s3161_s10 = inlined_call_operand.hbm [shape: f32[2,32,256], index: 10, kind: output, shape index: {}]  }
   0x1   :  { %17 = vsyncpa [#allocation3 + $0x1], 0  ;;  %s2665_s13 = smov 0   ;;  %s2667_s14 = smov 0  }
   0x2   :  { %s2669_s15 = smov 0   ;;  %s2671_s16 = smov 0  }
   0x3 LB: > { %s2686_s17 = sadd.s32 4294967295, %s2591_s16   ;;  %s2233_s18 = sadd.s32 4294967294, %s2591_s16   ;;  %s2591_s16 = sphi %s2671_s16, %s3169_s16   ;;  %s2587_s15 = sphi %s2669_s15, %s3168_s15   ;;  %s2583_s14 = sphi %s2667_s14, %s3167_s14   ;;  %s2579_s13 = sphi %s2665_s13, %s3166_s13  }
   0x4   : > { %s2690_s19 = sadd.s32 1, %s2591_s16   ;;  %s245_s20 = sadd.s32 1, %s2587_s15 }
   0x5   : > { %s242_s21 = ssub.s32 %s2591_s16, %s2690_s19  ;;  %p255_p0 = scmp.ne.s32.totalorder %s2587_s15, %s2583_s14 }
   0x6   : > { %p243_p1 = scmp.eq.s32.totalorder %s242_s21, 0  ;;  %p256_p2 = scmp.eq.s32.totalorder %s2686_s17, 1 }
   0x7   : > { %p261_p3 = scmp.ne.s32.totalorder %s2583_s14, %s2579_s13  ;;  %p262_p4 = scmp.eq.s32.totalorder %s2233_s18, 1 }
   0x8   : > { %s2701_s22 = scalar_select %p243_p1, %s2587_s15, %s245_s20  }
   0x9   : > { %p2703_p5 = por %p256_p2, %p255_p0  ;;  %p2707_p6 = por %p262_p4, %p261_p3 }
   0xa   : > { %p2236_p7 = scmp.ge.s32.totalorder %s2591_s16, 1  ;;  %p315_p8 = scmp.lt.s32.totalorder %s2591_s16, 3 }
   0xc   : > { %p316_p9 = pnand %p2236_p7, %p315_p8 }
   0xd   : > { %p353_p10 = scmp.lt.s32.totalorder (!%p316_p9), %s2686_s17, 1  ;;  %v450_v0 = vlaneseq (!%p316_p9)  ;;  %v2593_v1 = vmov (!%p316_p9), 0.0   ;;  %v2594_v2 = vmov (!%p316_p9), 0   ;;  %v367_v3 = vld [vmem:[%s3153_s2] sm:$0xf] (!%p316_p9)  ;;  %s2595_s25 = smov (!%p316_p9), 126  }
   0xe   : > { %319 = sbr.rel (%p316_p9) target bundleno = 1277 (0x4fd), region = 60  ;;  %441 = vmatprep.mubr.f32.mxu0 (!%p316_p9), %v2593_v1  ;;  %2467 = vset.pattern.permute.xlu0 (!%p316_p9), %v2594_v2  ;;  %v2241_v5 = vld [vmem:[%s3160_s9 + $0x1] ss:$8 sm:$0x3] (!%p316_p9)  ;;  %s2596_s28 = smov (!%p316_p9), 125   ;;  %vm373_vm0 = vcmask (!%p316_p9), 261120  }
   0xf   : > { %370 = vperm.xlu0 (!%p316_p9), %2467, %v367_v3   ;;  %v451_v4 = vshrl.u32 (!%p316_p9), %v450_v0, 7  ;;  %586 = vmatprep.mubr.f32.mxu1 (!%p316_p9), %v2593_v1  ;;  %v448_v8 = vld [vmem:[%s3160_s9] ss:$8 sm:$0x3] (!%p316_p9)  ;;  %s2597_s18 = smov (!%p316_p9), 127   ;;  %s2598_s26 = smov (!%p316_p9), 1  }
  0x10   : > { %2468 = vset.pattern.permute.xlu1 (!%p316_p9), %v2594_v2  ;;  %v2252_v24 = vld [vmem:[%s3160_s9 + $0x2] ss:$8 sm:$0x3] (!%p316_p9)  ;;  %v2265_v28 = vld [vmem:[%s3160_s9 + $0x4] ss:$8 sm:$0x3] (!%p316_p9) }
  0x11   : > { %v456_v6 = vsub.s32 (!%p316_p9), 1, %v451_v4  ;;  %v452_v7 = vsub.s32 (!%p316_p9), 0, %v451_v4  ;;  %v366_v29 = vld [vmem:[%s3152_s1] sm:$0xf] (!%p316_p9)  ;;  %s2600_s11 = smov (!%p316_p9), 3   ;;  %vm487_vm1 = vcmask (!%p316_p9), 1031168  }
  0x12   : > { %v2272_v32 = vld [vmem:[%s3160_s9 + $0x5] ss:$8 sm:$0x3] (!%p316_p9)  ;;  %v2279_v35 = vld [vmem:[%s3160_s9 + $0x6] ss:$8 sm:$0x3] (!%p316_p9) }
  0x13   : > { %v482_v12 = vrot.slane (!%p316_p9), %v2241_v5, %v456_v6  ;;  %v478_v13 = vrot.slane (!%p316_p9), %v2241_v5, %v452_v7  ;;  %v453_v18 = vrot.slane (!%p316_p9), %v448_v8, %v452_v7  ;;  %v457_v23 = vrot.slane (!%p316_p9), %v448_v8, %v456_v6  ;;  %s2602_s12 = smov (!%p316_p9), 48   ;;  %s2604_s20 = smov (!%p316_p9), 112  }
  0x14   : > { %v704_v26 = vrot.slane (!%p316_p9), %v2252_v24, %v452_v7  ;;  %v708_v27 = vrot.slane (!%p316_p9), %v2252_v24, %v456_v6  ;;  %v929_v30 = vrot.slane (!%p316_p9), %v2265_v28, %v452_v7  ;;  %v933_v31 = vrot.slane (!%p316_p9), %v2265_v28, %v456_v6  ;;  %v1305_v24 = vld [vmem:[%s3155_s4 + $0x8] sm:$0xf] (!%p316_p9) }
  0x15   : > { %s354_s27 = scalar_select %p353_p10, %s2686_s17, 1  ;;  %485 = vrot.lane.b32.xlu1 %v482_v12, %s2595_s25  ;;  %483 = vrot.lane.b32.xlu0 %v478_v13, %s2595_s25  ;;  %v1056_v33 = vrot.slane %v2272_v32, %v452_v7  ;;  %v1060_v34 = vrot.slane %v2272_v32, %v456_v6  ;;  %v1183_v36 = vrot.slane %v2279_v35, %v452_v7  ;;  %vm462_vm2 = vcmask 1022976  }
  0x16   : > { %v1187_v37 = vrot.slane %v2279_v35, %v456_v6  ;;  %vm713_vm3 = vcmask 1039360   ;;  %vm733_vm4 = vcmask 7168   ;;  %vm507_vm5 = vcmask 15360  }
  0x17   : > { %s2324_s30 = sshll.u32 %s354_s27, 6  ;;  %vm608_vm6 = vcmask 23552   ;;  %vm517_vm7 = vcmask 1043456   ;;  %vm510_vm8 = vcmask 31744   ;;  %vm2607_vm9 = vmmov 1   ;;  %s350_s27 = sand.u32 1, %s2583_s14  }
  0x18   : > { %s357_s21 = scalar_lea.vmem %s3151_s0, %s2324_s30  ;;  %s2599_s30 = smov 2   ;;  %vm2969_vm10 = vmpackc.low %vm517_vm7, %vm2607_vm9  ;;  %vm1433_vm11 = vcmask 392192   ;;  %vm1344_vm12 = vcmask 97280   ;;  %vm1530_vm13 = vcmask 130048   ;;  %vm1711_vm14 = vcmask 916480  }
  0x19   : > { %v2729_v9 = vld [vmem:[%s357_s21 + $0x8] sm:$0xff]  ;;  %v2731_v10 = vld [vmem:[%s357_s21 + $0x18] sm:$0xff]  ;;  %v2733_v11 = vld [vmem:[%s357_s21] sm:$0xff]  ;;  %458 = vrot.lane.b32.xlu1 %v453_v18, %s2596_s28  ;;  %vm1810_vm15 = vcmask 785408   ;;  %s2237_s29 = sshll.u32 %s350_s27, 6 }
  0x1a   : > { %v2326_v14 = vpack.c.bf16 %v2731_v10, %v2729_v9  ;;  %v2737_v15 = vld [vmem:[%s357_s21 + $0x10] sm:$0xff]  ;;  %v2739_v16 = vld [vmem:[%s357_s21 + $0x28] sm:$0xff]  ;;  %v2741_v17 = vld [vmem:[%s357_s21 + $0x38] sm:$0xff]  ;;  %460 = vrot.lane.b32.xlu0 %v457_v23, %s2596_s28 }
  0x1b   : > { %v2328_v19 = vpack.c.bf16 %v2737_v15, %v2733_v11  ;;  %v2330_v20 = vpack.c.bf16 %v2741_v17, %v2739_v16  ;;  %v2747_v21 = vld [vmem:[%s357_s21 + $0x20] sm:$0xff]  ;;  %v2749_v22 = vld [vmem:[%s357_s21 + $0x30] sm:$0xff]  ;;  %s2605_s21 = smov 96  }
  0x1c   : > { %2327 = vmatprep.subr.bf16.mxu0 %v2326_v14  ;;  %v2332_v25 = vpack.c.bf16 %v2749_v22, %v2747_v21 }
  0x1d   : > { %2329 = vmatpush1.bf16.msra.mxu0 %v2328_v19  ;;  %709 = vrot.lane.b32.xlu1 %v704_v26, %s2597_s18 }
  0x1e   : > { %2331 = vmatprep.subr.bf16.mxu0 %v2330_v20  ;;  %711 = vrot.lane.b32.xlu0 %v708_v27, %s2597_s18 }
  0x21   : > { %2333 = vmatpush1.bf16.msra.mxu0 %v2332_v25  ;;  %934 = vrot.lane.b32.xlu1 %v929_v30, %s2598_s26  ;;  %v1304_v25 = vld [vmem:[%s3155_s4] sm:$0xff]  ;;  %v2242_v30 = vld [vmem:[%s3154_s3 + $0x10] sm:$0xff] }
  0x22   : > { %936 = vrot.lane.b32.xlu0 %v933_v31, %s2598_s26 }
  0x24   : > { %2240 = vmatmul.mubr.msk.f32.vlgmr.msra.gmra.mrb[0].mxu0 %vm373_vm0, %v366_v29 }
  0x25   : > { %1416 = vmatprep.mubr.f32.mxu0 %v2593_v1  ;;  %1061 = vrot.lane.b32.xlu1 %v1056_v33, %s2599_s30 }
  0x26   : > { %1063 = vrot.lane.b32.xlu0 %v1060_v34, %s2599_s30  ;;  %v2243_v34 = vld [vmem:[%s3154_s3 + $0x18] sm:$0xf] }
  0x29   : > { %1188 = vrot.lane.b32.xlu1 %v1183_v36, %s2600_s11 }
  0x2a   : > { %1190 = vrot.lane.b32.xlu0 %v1187_v37, %s2600_s11 }
  0x87   : > { %v486_v39 = vpop.permute.xlu1 %485 }
  0x8b   : > { %v459_v45 = vpop.permute.xlu1 %458 }
  0x8c   : > { %v467_v56 = vmul.f32 0.0, %v459_v45 }
  0x8e   : > { %v371_v38 = vpop.permute.xlu0 %370 }
  0x8f   : > { %v710_v52 = vpop.permute.xlu1 %709 }
  0x90   : > { %v718_v62 = vmul.f32 0.0, %v710_v52 }
  0x92   : > { %v484_v40 = vpop.permute.xlu0 %483 }
  0x93   : > { %v488_v41 = vsel %vm487_vm1, %v484_v40, %v486_v39  ;;  %v492_v51 = vmul.f32 0.0, %v484_v40  ;;  %v935_v58 = vpop.permute.xlu1 %934 }
  0x96   : > { %v461_v46 = vpop.permute.xlu0 %460 }
  0x97   : > { %v463_v50 = vsel %vm462_vm2, %v459_v45, %v461_v46  ;;  %v1062_v0 = vpop.permute.xlu1 %1061 }
  0x9a   : > { %v712_v53 = vpop.permute.xlu0 %711 }
  0x9b   : > { %v714_v57 = vsel %vm713_vm3, %v710_v52, %v712_v53  ;;  %v1189_v8 = vpop.permute.xlu1 %1188  ;;  %v2254_v52 = vld [vmem:[%s3154_s3 + $0x28] sm:$0xf] }
  0x9e   : > { %v937_v59 = vpop.permute.xlu0 %936 }
  0x9f   : > { %v938_v63 = vsel %vm733_vm4, %v935_v58, %v937_v59  ;;  %v944_v4 = vmul.f32 0.0, %v937_v59  ;;  %v2260_v59 = vld [vmem:[%s3154_s3 + $0x38] sm:$0xf] }
  0xa2   : > { %v1064_v2 = vpop.permute.xlu0 %1063 }
  0xa3   : > { %v1065_v5 = vsel %vm507_vm5, %v1062_v0, %v1064_v2  ;;  %v1071_v7 = vmul.f32 0.0, %v1064_v2  ;;  %v2267_v2 = vld [vmem:[%s3154_s3 + $0x48] sm:$0xf] }
  0xa6   : > { %v1191_v12 = vpop.permute.xlu0 %1190 }
  0xa7   : > { %v1192_v14 = vsel %vm608_vm6, %v1189_v8, %v1191_v12  ;;  %v1198_v20 = vmul.f32 0.0, %v1191_v12 }
  0xf7   : > { %v443_v42 = vpop.f32.mrb[0].mxu0 }
  0xf8   : > { %v2781_v43 = vadd.f32 %v443_v42, %v371_v38  ;;  %v445_v44 = vpop.f32.mrb[1].mxu0 }
  0xf9   : > { %v2783_v47 = vadd.f32 %v445_v44, %v371_v38  ;;  %v471_v44 = vld [vmem:[%s3154_s3 + $0x8] sm:$0xf] }
  0xfa   : > { %v493_v48 = vmul.f32 %v488_v41, %v2781_v43  ;;  %v468_v54 = vmul.f32 %v463_v50, %v2781_v43  ;;  %v719_v60 = vmul.f32 %v714_v57, %v2781_v43  ;;  %v942_v6 = vmul.f32 %v935_v58, %v2781_v43 }
  0xfb   : > { %v494_v49 = vmul.f32 %v486_v39, %v2783_v47  ;;  %v469_v55 = vmul.f32 %v461_v46, %v2783_v47  ;;  %v720_v61 = vmul.f32 %v712_v53, %v2783_v47  ;;  %v943_v3 = vmul.f32 %v938_v63, %v2783_v47  ;;  %v470_v39 = vld [vmem:[%s3154_s3] sm:$0xff] }
  0xfc   : > { %503 = vrot.lane.b32.xlu1 %v493_v48, %s2599_s30  ;;  %v1070_v13 = vmul.f32 %v1065_v5, %v2783_v47  ;;  %v1069_v18 = vmul.f32 %v1062_v0, %v2781_v43  ;;  %v1197_v19 = vmul.f32 %v1192_v14, %v2783_v47  ;;  %v1196_v23 = vmul.f32 %v1189_v8, %v2781_v43  ;;  %v2281_v8 = vld [vmem:[%s3154_s3 + $0x68] sm:$0xf] }
  0xfd   : > { %505 = vrot.lane.b32.xlu0 %v494_v49, %s2599_s30  ;;  %v2253_v49 = vld [vmem:[%s3154_s3 + $0x20] sm:$0xff] }
 0x100   : > { %501 = vrot.lane.b32.xlu1 %v492_v51, %s2599_s30  ;;  %s3082_s30 = scalar_lea.vmem [#allocation2], %s2237_s29 }
 0x101   : > { %604 = vrot.lane.b32.xlu0 %v468_v54, %s2600_s11  ;;  %v2259_v54 = vld [vmem:[%s3154_s3 + $0x30] sm:$0xff] }
 0x104   : > { %606 = vrot.lane.b32.xlu1 %v469_v55, %s2600_s11 }
 0x105   : > { %602 = vrot.lane.b32.xlu0 %v467_v56, %s2600_s11  ;;  %s2601_s11 = smov 32  }
 0x108   : > { %729 = vrot.lane.b32.xlu1 %v719_v60, %s2598_s26  ;;  %v2266_v60 = vld [vmem:[%s3154_s3 + $0x40] sm:$0xff] }
 0x109   : > { %731 = vrot.lane.b32.xlu0 %v720_v61, %s2598_s26 }
 0x10c   : > { %727 = vrot.lane.b32.xlu1 %v718_v62, %s2598_s26  ;;  %s2608_s26 = smov [#allocation2]  }
 0x10d   : > { %953 = vrot.lane.b32.xlu0 %v943_v3, %s2597_s18  ;;  %s2533_s29 = sshll.u32 %s2608_s26, 4  ;;  %s2534_s29 = int_to_ptr.vmem [resolvable:$false] %s2533_s29 }
 0x110   : > { %955 = vrot.lane.b32.xlu1 %v944_v4, %s2597_s18  ;;  %v2273_v4 = vld [vmem:[%s3154_s3 + $0x50] sm:$0xff] }
 0x111   : > { %951 = vrot.lane.b32.xlu0 %v942_v6, %s2597_s18  ;;  %v2274_v6 = vld [vmem:[%s3154_s3 + $0x58] sm:$0xf]  ;;  %s2603_s18 = smov 16  }
 0x114   : > { %1080 = vrot.lane.b32.xlu1 %v1070_v13, %s2595_s25 }
 0x115   : > { %1082 = vrot.lane.b32.xlu0 %v1071_v7, %s2595_s25  ;;  %v2280_v7 = vld [vmem:[%s3154_s3 + $0x60] sm:$0xff] }
 0x118   : > { %1078 = vrot.lane.b32.xlu1 %v1069_v18, %s2595_s25  ;;  %s2606_s25 = smov 80  }
 0x119   : > { %1207 = vrot.lane.b32.xlu0 %v1197_v19, %s2596_s28 }
 0x11c   : > { %1209 = vrot.lane.b32.xlu1 %v1198_v20, %s2596_s28 }
 0x11d   : > { %1205 = vrot.lane.b32.xlu0 %v1196_v23, %s2596_s28 }
 0x120   : > { %1308 = vperm.xlu1 %2468, %v1304_v25  }
 0x121   : > { %1313 = vperm.xlu0 %2467, %v1305_v24  }
 0x16e   : > { %v504_v26 = vpop.permute.xlu1 %503 }
 0x16f   : > { %v506_v27 = vpop.permute.xlu0 %505 }
 0x170   : > { %v509_v28 = vsel %vm507_vm5, %v504_v26, %v506_v27 }
 0x171   : > { %2244 = vmatprep.subr.msk.mxu1 %vm517_vm7, %v509_v28 }
 0x172   : > { %v502_v29 = vpop.permute.xlu1 %501 }
 0x173   : > { %v605_v31 = vpop.permute.xlu0 %604  ;;  %v508_v32 = vsel %vm507_vm5, %v502_v29, %v504_v26 }
 0x174   : > { %2245 = vmatpush1.msk.msra.mxu1 %vm517_vm7, %v508_v32 }
 0x175   : > { %2246 = vmatmul.mubr.msk.f32.vlgmr.msra.gmra.mrb[0].mxu1 %vm510_vm8, %v2242_v30 }
 0x176   : > { %v607_v33 = vpop.permute.xlu1 %606  ;;  %592 = vmatprep.mubr.f32.mxu1 %v2593_v1 }
 0x177   : > { %v610_v35 = vsel %vm608_vm6, %v605_v31, %v607_v33  ;;  %v603_v36 = vpop.permute.xlu0 %602  ;;  %v1998_v33 = vld [vmem:[%s3157_s6] sm:$0xf] }
 0x178   : > { %v609_v37 = vsel %vm608_vm6, %v603_v36, %v605_v31  ;;  %2248 = vmatprep.subr.msk.mxu1 %vm517_vm7, %v610_v35  ;;  %v2010_v35 = vld [vmem:[%s3159_s8] sm:$0xff]  ;;  %v2013_v36 = vld [vmem:[%s3159_s8 + $0x18] sm:$0xff] }
 0x179   : > { %2247 = vmatmul.mubr.msk.f32.gmra.mrb[2].mxu1 %vm510_vm8, %v2243_v34  ;;  %v2011_v34 = vld [vmem:[%s3159_s8 + $0x8] sm:$0xff] }
 0x17a   : > { %2249 = vmatpush1.msk.msra.mxu1 %vm517_vm7, %v609_v37  ;;  %v730_v38 = vpop.permute.xlu1 %729  ;;  %685 = vmatprep.mubr.f32.mxu1 %v2593_v1  ;;  %v2012_v37 = vld [vmem:[%s3159_s8 + $0x10] sm:$0xff] }
 0x17b   : > { %v732_v40 = vpop.permute.xlu0 %731 }
 0x17c   : > { %v735_v41 = vsel %vm733_vm4, %v730_v38, %v732_v40 }
 0x17d   : > { %2250 = vmatmul.mubr.msk.f32.vlgmr.msra.gmra.mrb[0].mxu1 %vm510_vm8, %v470_v39  ;;  %2255 = vmatprep.subr.msk.mxu1 %vm517_vm7, %v735_v41 }
 0x17e   : > { %v728_v42 = vpop.permute.xlu1 %727  ;;  %691 = vmatprep.mubr.f32.mxu1 %v2593_v1 }
 0x17f   : > { %v734_v45 = vsel %vm733_vm4, %v728_v42, %v730_v38  ;;  %v954_v46 = vpop.permute.xlu0 %953 }
 0x180   : > { %2256 = vmatpush1.msk.msra.mxu1 %vm517_vm7, %v734_v45 }
 0x181   : > { %2251 = vmatmul.mubr.msk.f32.gmra.mrb[2].mxu1 %vm510_vm8, %v471_v44  ;;  %2261 = vmatprep.subr.msk.mxu1 %vm517_vm7, %v2783_v47 }
 0x182   : > { %v956_v48 = vpop.permute.xlu1 %955  ;;  %810 = vmatprep.mubr.f32.mxu1 %v2593_v1 }
 0x183   : > { %v952_v50 = vpop.permute.xlu0 %951  ;;  %v958_v51 = vsel %vm713_vm3, %v954_v46, %v956_v48 }
 0x184   : > { %v957_v56 = vsel %vm713_vm3, %v952_v50, %v954_v46 }
 0x185   : > { %2257 = vmatmul.mubr.msk.f32.vlgmr.msra.gmra.mrb[0].mxu1 %vm510_vm8, %v2253_v49 }
 0x186   : > { %2262 = vmatpush1.msk.msra.mxu1 %vm517_vm7, %v2781_v43  ;;  %816 = vmatprep.mubr.f32.mxu1 %v2593_v1  ;;  %v1081_v53 = vpop.permute.xlu1 %1080 }
 0x187   : > { %2268 = vmatprep.subr.msk.mxu1 %vm517_vm7, %v958_v51  ;;  %v1083_v55 = vpop.permute.xlu0 %1082 }
 0x188   : > { %v1085_v58 = vsel %vm487_vm1, %v1081_v53, %v1083_v55 }
 0x189   : > { %2258 = vmatmul.mubr.msk.f32.gmra.mrb[2].mxu1 %vm510_vm8, %v2254_v52 }
 0x18a   : > { %906 = vmatprep.mubr.f32.mxu1 %v2593_v1  ;;  %v1079_v57 = vpop.permute.xlu1 %1078 }
 0x18b   : > { %v1208_v62 = vpop.permute.xlu0 %1207  ;;  %v1084_v63 = vsel %vm487_vm1, %v1079_v57, %v1081_v53 }
 0x18d   : > { %2263 = vmatmul.mubr.msk.f32.vlgmr.msra.gmra.mrb[0].mxu1 %vm510_vm8, %v2259_v54 }
 0x18e   : > { %2269 = vmatpush1.msk.msra.mxu1 %vm517_vm7, %v957_v56  ;;  %912 = vmatprep.mubr.f32.mxu1 %v2593_v1  ;;  %v1210_v61 = vpop.permute.xlu1 %1209 }
 0x18f   : > { %2275 = vmatprep.subr.msk.mxu1 %vm517_vm7, %v1085_v58  ;;  %v1212_v0 = vsel %vm462_vm2, %v1208_v62, %v1210_v61  ;;  %v1206_v3 = vpop.permute.xlu0 %1205 }
 0x190   : > { %v1211_v5 = vsel %vm462_vm2, %v1206_v3, %v1208_v62 }
 0x191   : > { %2264 = vmatmul.mubr.msk.f32.gmra.mrb[2].mxu1 %vm510_vm8, %v2260_v59 }
 0x192   : > { %1033 = vmatprep.mubr.f32.mxu1 %v2593_v1 }
 0x195   : > { %2270 = vmatmul.mubr.msk.f32.vlgmr.msra.gmra.mrb[0].mxu1 %vm510_vm8, %v2266_v60  ;;  %v2286_v60 = vld [vmem:[%s3156_s5 + $0x4] sm:$0xf] }
 0x196   : > { %2276 = vmatpush1.msk.msra.mxu1 %vm517_vm7, %v1084_v63  ;;  %1039 = vmatprep.mubr.f32.mxu1 %v2593_v1 }
 0x197   : > { %2282 = vmatprep.subr.msk.mxu1 %vm517_vm7, %v1212_v0 }
 0x199   : > { %2271 = vmatmul.mubr.msk.f32.gmra.mrb[2].mxu1 %vm510_vm8, %v2267_v2 }
 0x19a   : > { %1160 = vmatprep.mubr.f32.mxu1 %v2593_v1 }
 0x19d   : > { %2277 = vmatmul.mubr.msk.f32.vlgmr.msra.gmra.mrb[0].mxu1 %vm510_vm8, %v2273_v4 }
 0x19e   : > { %2283 = vmatpush1.msk.msra.mxu1 %vm517_vm7, %v1211_v5  ;;  %1166 = vmatprep.mubr.f32.mxu1 %v2593_v1 }
 0x19f   : > { %v1309_v12 = vpop.permute.xlu1 %1308 }
 0x1a0   : > { %v1314_v20 = vpop.permute.xlu0 %1313 }
 0x1a1   : > { %2278 = vmatmul.mubr.msk.f32.gmra.mrb[2].mxu1 %vm510_vm8, %v2274_v6 }
 0x1a2   : > { %1287 = vmatprep.mubr.f32.mxu1 %v2593_v1 }
 0x1a5   : > { %2284 = vmatmul.mubr.msk.f32.vlgmr.msra.gmra.mrb[0].mxu1 %vm510_vm8, %v2280_v7 }
 0x1a6   : > { %1293 = vmatprep.mubr.f32.mxu1 %v2593_v1 }
 0x1a9   : > { %2285 = vmatmul.mubr.msk.f32.gmra.mrb[2].mxu1 %vm510_vm8, %v2281_v8 }
 0x278   : > { %v1289_v13 = vpop.f32.mrb[0].mxu1 }
 0x279   : > { %v2920_v14 = vadd.f32 %v1309_v12, %v1289_v13  ;;  %v1291_v18 = vpop.f32.mrb[1].mxu1 }
 0x27a   : > { %v2922_v19 = vadd.f32 %v1309_v12, %v1291_v18 }
 0x27c   : > { %v1295_v23 = vpop.f32.mrb[2].mxu1  ;;  %v2469_v24 = vpack.i.bf16 %v2922_v19, %v2920_v14  ;;  %v2499_v32 = vpack.i.bf16 %v2593_v1, %v2922_v19 }
 0x27d   : > { %v2926_v25 = vadd.f32 %v1314_v20, %v1295_v23  ;;  %v1297_v26 = vpop.f32.mrb[3].mxu1 }
 0x27e   : > { %v2928_v27 = vadd.f32 %v1314_v20, %v1297_v26  ;;  %2470 = vrot.lane.b32.xlu1 %v2469_v24, %s2601_s11  ;;  %v1320_v26 = vld [vmem:[%s3156_s5] sm:$0xf] }
 0x27f   : > { %v2355_v28 = vpack.c.bf16 %v2926_v25, %v2920_v14 }
 0x280   : > { %v2474_v29 = vpack.i.bf16 %v2928_v27, %v2926_v25  ;;  %v2504_v30 = vpack.i.bf16 %v2920_v14, %v2928_v27  ;;  %v2352_v31 = vpack.c.bf16 %v2928_v27, %v2922_v19  ;;  %v2297_v14 = vld [vmem:[%s3156_s5 + $0xc] sm:$0xf] }
 0x282   : > { %1328 = vrot.lane.b32.xlu1 %v2593_v1, %s2601_s11  ;;  %2475 = vrot.lane.b32.xlu0 %v2474_v29, %s2601_s11  ;;  %s2325_s11 = sshll.u32 %s2686_s17, 10  ;;  %s3109_s17 = scalar_lea.sflag [#allocation3], %s350_s27 }
 0x283   : > { %s3100_s28 = scalar_lea.hbm %s3161_s10, %s2325_s11  ;;  %s2535_s11 = scalar_lea.vmem %s2534_s29, 2048 }
 0x286   : > { %2485 = vrot.lane.b32.xlu1 %v2474_v29, %s2602_s12  ;;  %2480 = vrot.lane.b32.xlu0 %v2469_v24, %s2602_s12 }
 0x28a   : > { %2490 = vrot.lane.b32.xlu1 %v2469_v24, %s2603_s18  ;;  %1423 = vrot.lane.b32.xlu0 %v2593_v1, %s2602_s12  ;;  %s2171_s12 = sshll.u32 %s3082_s30, 4  ;;  %s3103_s12 = int_to_ptr.vmem [resolvable:$true] %s2171_s12 }
 0x28b   : > { %p2536_p0 = scmp.lt.s32.totalorder %s3103_s12, %s2534_s29 }
 0x28e   : > { %1520 = vrot.lane.b32.xlu1 %v2593_v1, %s2603_s18  ;;  %2495 = vrot.lane.b32.xlu0 %v2474_v29, %s2603_s18 }
 0x292   : > { %2505 = vrot.lane.b32.xlu1 %v2504_v30, %s2604_s20  ;;  %2500 = vrot.lane.b32.xlu0 %v2499_v32, %s2604_s20 }
 0x296   : > { %2510 = vrot.lane.b32.xlu1 %v2499_v32, %s2605_s21  ;;  %1707 = vrot.lane.b32.xlu0 %v2926_v25, %s2604_s20 }
 0x29a   : > { %1806 = vrot.lane.b32.xlu1 %v2926_v25, %s2605_s21  ;;  %2515 = vrot.lane.b32.xlu0 %v2504_v30, %s2605_s21 }
 0x29e   : > { %2525 = vrot.lane.b32.xlu1 %v2504_v30, %s2606_s25  ;;  %2520 = vrot.lane.b32.xlu0 %v2499_v32, %s2606_s25 }
 0x2a2   : > { %2001 = vperm.xlu1 %2468, %v1998_v33   ;;  %1905 = vrot.lane.b32.xlu0 %v2926_v25, %s2606_s25  ;;  %s2529_s25 = scalar_lea.vmem %s3103_s12, 1024 }
 0x2a3   : > { %p2530_p11 = scmp.ne.s32.totalorder %s3103_s12, %s2529_s25  ;;  %p2537_p1 = scmp.lt.s32.totalorder %s2535_s11, %s2529_s25 }
 0x2a5   : > { %p2531_p12 = pnand %p2530_p11, %p2703_p5  ;;  %p2538_p2 = por %p2537_p1, %p2536_p0 }
 0x2a6   : > { %2021 = vperm.xlu1 %2468, %v2011_v34   ;;  %2016 = vperm.xlu0 %2467, %v2010_v35  }
 0x2a7   : > { %p2532_p13 = pneg %p2531_p12 }
 0x2a9   : > { %p2539_p3 = pnand %p2538_p2, %p2532_p13 }
 0x2aa   : > { %2031 = vperm.xlu1 %2468, %v2013_v36   ;;  %2026 = vperm.xlu0 %2467, %v2012_v37  }
 0x2f0   : > { %v2471_v38 = vpop.permute.xlu1 %2470 }
 0x2f1   : > { %v2473_v39 = vunpack.i.h.bf16 %v2471_v38  ;;  %v2472_v40 = vunpack.i.l.bf16 %v2471_v38 }
 0x2f3   : > { %v1339_v46 = vsel %vm373_vm0, %v2472_v40, %v2473_v39 }
 0x2f4   : > { %v1329_v41 = vpop.permute.xlu1 %1328  ;;  %v2476_v42 = vpop.permute.xlu0 %2475 }
 0x2f5   : > { %v2478_v44 = vunpack.i.h.bf16 %v2476_v42  ;;  %v2477_v45 = vunpack.i.l.bf16 %v2476_v42  ;;  %v1338_v48 = vsel %vm373_vm0, %v1329_v41, %v2472_v40  ;;  %v2293_v40 = vld [vmem:[%s3156_s5 + $0x8] sm:$0xf] }
 0x2f7   : > { %v1340_v49 = vsel %vm373_vm0, %v1329_v41, %v2477_v45  ;;  %v1341_v50 = vsel %vm373_vm0, %v2477_v45, %v2478_v44  ;;  %vm1909_vm0 = vcmask 654336  }
 0x2f8   : > { %v2334_v52 = vpack.c.bf16 %v1341_v50, %v1339_v46  ;;  %v2337_v53 = vpack.c.bf16 %v1340_v49, %v1338_v48  ;;  %v2486_v54 = vpop.permute.xlu1 %2485  ;;  %v2481_v55 = vpop.permute.xlu0 %2480 }
 0x2f9   : > { %v2488_v56 = vunpack.i.h.bf16 %v2486_v54  ;;  %v2487_v57 = vunpack.i.l.bf16 %v2486_v54  ;;  %v2483_v58 = vunpack.i.h.bf16 %v2481_v55  ;;  %v2482_v59 = vunpack.i.l.bf16 %v2481_v55 }
 0x2fa   : > { %2336 = vmatprep.subr.msk.bf16.mxu0 %vm2969_vm10, %v2334_v52 }
 0x2fb   : > { %2339 = vmatpush1.bf16.msk.msra.mxu0 %vm2969_vm10, %v2337_v53  ;;  %v1435_v61 = vsel %vm1433_vm11, %v2482_v59, %v2483_v58  ;;  %v1437_v62 = vsel %vm1433_vm11, %v2487_v57, %v2488_v56 }
 0x2fc   : > { %v2491_v63 = vpop.permute.xlu1 %2490  ;;  %v1424_v0 = vpop.permute.xlu0 %1423  ;;  %v2340_v2 = vpack.c.bf16 %v1437_v62, %v1435_v61  ;;  %v2301_v62 = vld [vmem:[%s3156_s5 + $0x10] sm:$0xf] }
 0x2fd   : > { %v1434_v3 = vsel %vm1433_vm11, %v1424_v0, %v2482_v59  ;;  %v1436_v4 = vsel %vm1433_vm11, %v1424_v0, %v2487_v57  ;;  %v2493_v6 = vunpack.i.h.bf16 %v2491_v63  ;;  %v2492_v7 = vunpack.i.l.bf16 %v2491_v63 }
 0x2fe   : > { %v2343_v5 = vpack.c.bf16 %v1436_v4, %v1434_v3  ;;  %2289 = vmatmul.mubr.msk.f32.vlgmr.msra.gmra.mrb[2].mxu0 %vm1344_vm12, %v2286_v60  ;;  %2342 = vmatprep.subr.msk.bf16.mxu0 %vm2969_vm10, %v2340_v2 }
 0x2ff   : > { %1511 = vmatprep.mubr.f32.mxu0 %v2593_v1  ;;  %v1532_v29 = vsel %vm1530_vm13, %v2492_v7, %v2493_v6 }
 0x300   : > { %v1521_v8 = vpop.permute.xlu1 %1520  ;;  %v2496_v12 = vpop.permute.xlu0 %2495  ;;  %2345 = vmatpush1.bf16.msk.msra.mxu0 %vm2969_vm10, %v2343_v5 }
 0x301   : > { %v2498_v13 = vunpack.i.h.bf16 %v2496_v12  ;;  %v2497_v18 = vunpack.i.l.bf16 %v2496_v12  ;;  %v1531_v20 = vsel %vm1530_vm13, %v1521_v8, %v2492_v7  ;;  %v2305_v7 = vld [vmem:[%s3156_s5 + $0x14] sm:$0xf] }
 0x303   : > { %v1533_v23 = vsel %vm1530_vm13, %v1521_v8, %v2497_v18  ;;  %v1534_v24 = vsel %vm1530_vm13, %v2497_v18, %v2498_v13  ;;  %v2309_v13 = vld [vmem:[%s3156_s5 + $0x18] sm:$0xf] }
 0x304   : > { %v2349_v30 = vpack.c.bf16 %v1533_v23, %v1531_v20  ;;  %v2506_v32 = vpop.permute.xlu1 %2505  ;;  %v2501_v33 = vpop.permute.xlu0 %2500  ;;  %v2346_v34 = vpack.c.bf16 %v1534_v24, %v1532_v29 }
 0x305   : > { %v2507_v35 = vunpack.i.l.bf16 %v2506_v32  ;;  %v2503_v36 = vunpack.i.h.bf16 %v2501_v33  ;;  %v2502_v37 = vunpack.i.l.bf16 %v2501_v33  ;;  %v2508_v19 = vunpack.i.h.bf16 %v2506_v32  ;;  %v2009_v32 = vld [vmem:[%s3158_s7 + $0x18] sm:$0xff] }
 0x306   : > { %2292 = vmatmul.mubr.msk.f32.vlgmr.msra.gmra.mrb[2].mxu0 %vm1344_vm12, %v1320_v26  ;;  %2348 = vmatprep.subr.msk.bf16.mxu0 %vm2969_vm10, %v2346_v34 }
 0x307   : > { %2351 = vmatpush1.bf16.msk.msra.mxu0 %vm2969_vm10, %v2349_v30  ;;  %1608 = vmatprep.mubr.f32.mxu0 %v2593_v1  ;;  %v1713_v41 = vsel %vm1711_vm14, %v2502_v37, %v2503_v36  ;;  %v1715_v42 = vsel %vm1711_vm14, %v2507_v35, %v2503_v36  ;;  %v1712_v25 = vsel %vm1711_vm14, %v2508_v19, %v2502_v37  ;;  %v2006_v30 = vld [vmem:[%s3158_s7] sm:$0xff] }
 0x308   : > { %v2511_v38 = vpop.permute.xlu1 %2510  ;;  %v1708_v39 = vpop.permute.xlu0 %1707  ;;  %2354 = vmatprep.subr.msk.bf16.mxu0 %vm2969_vm10, %v2352_v31  ;;  %v2358_v46 = vpack.c.bf16 %v1715_v42, %v1713_v41 }
 0x309   : > { %v2513_v27 = vunpack.i.h.bf16 %v2511_v38  ;;  %v2512_v31 = vunpack.i.l.bf16 %v2511_v38  ;;  %v1714_v49 = vsel %vm1711_vm14, %v1708_v39, %v2507_v35 }
 0x30a   : > { %v2361_v54 = vpack.c.bf16 %v1714_v49, %v1712_v25 }
 0x30b   : > { %v1812_v53 = vsel %vm1810_vm15, %v2512_v31, %v2513_v27 }
 0x30c   : > { %v2516_v44 = vpop.permute.xlu0 %2515  ;;  %v1807_v45 = vpop.permute.xlu1 %1806 }
 0x30d   : > { %v2517_v48 = vunpack.i.l.bf16 %v2516_v44  ;;  %v2518_v55 = vunpack.i.h.bf16 %v2516_v44 }
 0x30e   : > { %2296 = vmatmul.mubr.msk.f32.vlgmr.msra.gmra.mrb[2].mxu0 %vm1344_vm12, %v2293_v40 }
 0x30f   : > { %2357 = vmatpush1.bf16.msk.msra.mxu0 %vm2969_vm10, %v2355_v28  ;;  %1690 = vmatprep.mubr.f32.mxu0 %v2593_v1  ;;  %v1814_v50 = vsel %vm1810_vm15, %v2517_v48, %v2513_v27  ;;  %v1811_v60 = vsel %vm1810_vm15, %v2518_v55, %v2512_v31  ;;  %v1813_v61 = vsel %vm1810_vm15, %v1807_v45, %v2517_v48 }
 0x310   : > { %2360 = vmatprep.subr.msk.bf16.mxu0 %vm2969_vm10, %v2358_v46  ;;  %v2526_v28 = vpop.permute.xlu1 %2525  ;;  %v2521_v52 = vpop.permute.xlu0 %2520  ;;  %v2364_v56 = vpack.c.bf16 %v1814_v50, %v1812_v53  ;;  %v2367_v2 = vpack.c.bf16 %v1813_v61, %v1811_v60 }
 0x311   : > { %v2527_v57 = vunpack.i.l.bf16 %v2526_v28  ;;  %v2523_v58 = vunpack.i.h.bf16 %v2521_v52  ;;  %v2522_v59 = vunpack.i.l.bf16 %v2521_v52  ;;  %v2528_v5 = vunpack.i.h.bf16 %v2526_v28 }
 0x313   : > { %v1911_v63 = vsel %vm1909_vm0, %v2522_v59, %v2523_v58  ;;  %v1913_v0 = vsel %vm1909_vm0, %v2527_v57, %v2523_v58  ;;  %v1910_v8 = vsel %vm1909_vm0, %v2528_v5, %v2522_v59 }
 0x314   : > { %v2370_v3 = vpack.c.bf16 %v1913_v0, %v1911_v63  ;;  %v1906_v4 = vpop.permute.xlu0 %1905 }
 0x315   : > { %v1912_v6 = vsel %vm1909_vm0, %v1906_v4, %v2527_v57 }
 0x316   : > { %2300 = vmatmul.mubr.msk.f32.vlgmr.msra.gmra.mrb[2].mxu0 %vm1344_vm12, %v2297_v14  ;;  %v2373_v12 = vpack.c.bf16 %v1912_v6, %v1910_v8 }
 0x317   : > { %2363 = vmatpush1.bf16.msk.msra.mxu0 %vm2969_vm10, %v2361_v54  ;;  %1789 = vmatprep.mubr.f32.mxu0 %v2593_v1 }
 0x318   : > { %2366 = vmatprep.subr.msk.bf16.mxu0 %vm2969_vm10, %v2364_v56 }
 0x31e   : > { %2304 = vmatmul.mubr.msk.f32.vlgmr.msra.gmra.mrb[2].mxu0 %vm1344_vm12, %v2301_v62 }
 0x31f   : > { %2369 = vmatpush1.bf16.msk.msra.mxu0 %vm2969_vm10, %v2367_v2  ;;  %1888 = vmatprep.mubr.f32.mxu0 %v2593_v1 }
 0x320   : > { %2372 = vmatprep.subr.msk.bf16.mxu0 %vm2969_vm10, %v2370_v3 }
 0x321   : > { %v2002_v26 = vpop.permute.xlu1 %2001 }
 0x325   : > { %v2017_v33 = vpop.permute.xlu0 %2016  ;;  %v2022_v39 = vpop.permute.xlu1 %2021 }
 0x326   : > { %2308 = vmatmul.mubr.msk.f32.vlgmr.msra.gmra.mrb[2].mxu0 %vm1344_vm12, %v2305_v7 }
 0x327   : > { %2375 = vmatpush1.bf16.msk.msra.mxu0 %vm2969_vm10, %v2373_v12  ;;  %1987 = vmatprep.mubr.f32.mxu0 %v2593_v1 }
 0x329   : > { %v2032_v49 = vpop.permute.xlu1 %2031 }
 0x32e   : > { %2312 = vmatmul.mubr.msk.f32.vlgmr.msra.gmra.mrb[2].mxu0 %vm1344_vm12, %v2309_v13 }
 0x32f   : > { %2116 = vmatprep.mubr.f32.mxu0 %v2593_v1 }
 0x401   : > { %v1989_v18 = vpop.f32.mrb[2].mxu0 }
 0x402   : > { %v1996_v20 = vadd.f32 %v1989_v18, %v2781_v43  ;;  %v1991_v23 = vpop.f32.mrb[3].mxu0  ;;  %v2007_v43 = vld [vmem:[%s3158_s7 + $0x8] sm:$0xff] }
 0x403   : > { %v1997_v24 = vadd.f32 %v1991_v23, %v2783_v47  ;;  %v2008_v47 = vld [vmem:[%s3158_s7 + $0x10] sm:$0xff] }
 0x404   : > { %v2004_v29 = vadd.f32 %v2002_v26, %v1996_v20 }
 0x405   : > { %v2005_v51 = vadd.f32 %v2002_v26, %v1997_v24 }
 0x407   : > { %2313 = vmatprep.subr.msk.mxu0 %vm517_vm7, %v2005_v51 }
 0x408   : > { %2314 = vmatpush1.msk.msra.mxu0 %vm517_vm7, %v2004_v29 }
 0x409   : > { %2315 = vmatmul.mubr.msk.f32.vlgmr.msra.gmra.mrb[4].mxu0 %vm510_vm8, %v2006_v30 }
 0x40a   : > { %2122 = vmatprep.mubr.f32.mxu0 %v2593_v1 }
 0x40d   : > { %2316 = vmatmul.mubr.msk.f32.gmra.mrb[6].mxu0 %vm510_vm8, %v2007_v43 }
 0x40e   : > { %2128 = vmatprep.mubr.f32.mxu0 %v2593_v1 }
 0x411   : > { %2317 = vmatmul.mubr.msk.f32.gmra.mrb[8].mxu0 %vm510_vm8, %v2008_v47 }
 0x412   : > { %2134 = vmatprep.mubr.f32.mxu0 %v2593_v1 }
 0x415   : > { %2318 = vmatmul.mubr.msk.f32.gmra.mrb[10].mxu0 %vm510_vm8, %v2009_v32 }
 0x4dc   : > { %v2118_v34 = vpop.f32.mrb[4].mxu0 }
 0x4dd   : > { %v2119_v35 = vadd.f32 %v2118_v34, %v2017_v33  ;;  %v2120_v36 = vpop.f32.mrb[5].mxu0 }
 0x4de   : > { %v2121_v37 = vadd.f32 %v2120_v36, %v2017_v33 }
 0x4df   : > { %v2141_v38 = vmul.f32 %v2119_v35, %v2733_v11  ;;  %v2027_v11 = vpop.permute.xlu0 %2026 }
 0x4e0   : > { %v2142_v40 = vmul.f32 %v2121_v37, %v2729_v9  ;;  %v2124_v1 = vpop.f32.mrb[6].mxu0 }
 0x4e1   : > { %2149 = vst [vmem:[%s3082_s30] sm:$0xff] %v2141_v38  ;;  %v2125_v41 = vadd.f32 %v2124_v1, %v2022_v39  ;;  %v2126_v42 = vpop.f32.mrb[7].mxu0 }
 0x4e2   : > { %2150 = vst [vmem:[%s3082_s30 + $0x8] sm:$0xff] %v2142_v40  ;;  %v2127_v44 = vadd.f32 %v2126_v42, %v2022_v39 }
 0x4e3   : > { %v2143_v45 = vmul.f32 %v2125_v41, %v2737_v15 }
 0x4e4   : > { %v2144_v9 = vmul.f32 %v2127_v44, %v2731_v10  ;;  %v2130_v46 = vpop.f32.mrb[8].mxu0 }
 0x4e5   : > { %2151 = vst [vmem:[%s3082_s30 + $0x10] sm:$0xff] %v2143_v45  ;;  %v2131_v48 = vadd.f32 %v2130_v46, %v2027_v11  ;;  %v2132_v19 = vpop.f32.mrb[9].mxu0 }
 0x4e6   : > { %2152 = vst [vmem:[%s3082_s30 + $0x18] sm:$0xff] %v2144_v9  ;;  %v2133_v27 = vadd.f32 %v2132_v19, %v2027_v11 }
 0x4e7   : > { %v2145_v31 = vmul.f32 %v2131_v48, %v2747_v21 }
 0x4e8   : > { %v2146_v50 = vmul.f32 %v2133_v27, %v2739_v16  ;;  %v2136_v15 = vpop.f32.mrb[10].mxu0 }
 0x4e9   : > { %2153 = vst [vmem:[%s3082_s30 + $0x20] sm:$0xff] %v2145_v31  ;;  %v2137_v10 = vadd.f32 %v2136_v15, %v2032_v49  ;;  %v2138_v14 = vpop.f32.mrb[11].mxu0 }
 0x4ea   : > { %2154 = vst [vmem:[%s3082_s30 + $0x28] sm:$0xff] %v2146_v50  ;;  %v2139_v25 = vadd.f32 %v2138_v14, %v2032_v49 }
 0x4eb   : > { %v2147_v28 = vmul.f32 %v2137_v10, %v2749_v22 }
 0x4ec   : > { %v2148_v21 = vmul.f32 %v2139_v25, %v2741_v17 }
 0x4ed   : > { %2155 = vst [vmem:[%s3082_s30 + $0x30] sm:$0xff] %v2147_v28 }
 0x4ee   : > { %2156 = vst [vmem:[%s3082_s30 + $0x38] sm:$0xff] %v2148_v21 }
 0x4ef   : > { %2542 = shalt.err (!%p2539_p3)
}
 0x4f0   : > { %s2543_s27 = scalar_lea.hbm %s3100_s28, 1024  ;;  %s2547_s21 = scalar_lea.hbm %s3161_s10, 2048 }
 0x4f1   : > { %p2544_p4 = scmp.ne.s32.totalorder %s3100_s28, %s2543_s27  ;;  %p2548_p9 = scmp.lt.u32.totalorder %s3100_s28, %s3161_s10 }
 0x4f2   : > { %p2549_p10 = scmp.lt.u32.totalorder %s2547_s21, %s2543_s27  ;;  %p2551_p12 = scmp.lt.u32.totalorder %s2543_s27, %s3100_s28 }
 0x4f3   : > { %p2545_p7 = pnand %p2544_p4, %p2703_p5 }
 0x4f4   : > { %p2550_p11 = por %p2549_p10, %p2548_p9 }
 0x4f5   : > { %p2546_p8 = pneg %p2545_p7 }
 0x4f6   : > { %p2552_p13 = por %p2551_p12, %p2550_p11 }
 0x4f8   : > { %p2553_p0 = pnand %p2552_p13, %p2546_p8 }
 0x4fa   : > { %2556 = shalt.err (!%p2553_p0)
}
 0x4fb   : > { %s2609_s25 = smov 256  }
 0x4fc   : > { %2412 = dma.vmem_to_hbm [thread:$0]  (%p2703_p5), %s3103_s12, 1024, %s3100_s28, %s3109_s17, %s2609_s25, %s2609_s25, %s2603_s18  }
 0x4fd PF: > { %p2418_p1 = scmp.ge.s32.totalorder %s2591_s16, 2  ;;  %s2186_s11 = sand.u32 1, %s2579_s13  }
 0x4fe   : > { %s2187_s27 = scalar_lea.sflag [#allocation3], %s2186_s11 }
 0x4ff   : > { %p2415_p2 = pnand %p2418_p1, %p2707_p6 }
 0x501   : > { %2574 = dma.done.wait (!%p2415_p2), %s2187_s27, 1024  }
 0x502   : > { %2576 = vsyncadd (!%p2415_p2), %s2187_s27, 4294966272  ;;  %p20_p3 = scmp.ge.s32.totalorder %s2690_s19, 4   ;;  %s3166_s13 = smov %s2583_s14 }
 0x503   : > { %s3167_s14 = smov %s2587_s15  ;;  %s3168_s15 = smov %s2701_s22 }
 0x504   : > { %s3169_s16 = smov %s2690_s19  ;;  %22 = sbr.rel (!%p20_p3) target bundleno = 3 (0x3), region = 112 }
 0x50b   :  { %2192 = vsyncpa [#allocation3], 1 }
 0x50c   :  { %2194 = vsyncpa [#allocation3 + $0x1], 1 }

</bundles_post_ra>
